<compile_context>
chip_gen: v6e
topology: v6e:2x2x1
jax: 0.10.0
libtpu: 0.0.40
codegen_flags: <defaults>
</compile_context>

<pallas_src>
import math
import functools

import jax
import jax.numpy as jnp
from jax.experimental import pallas as pl
from jax.experimental.pallas import tpu as pltpu

# --- toy config consistent with LxmertConfig semantics ---
BATCH = 2
SEQ = 8
HIDDEN = 32
NUM_HEADS = 4
LN_EPS = 1e-12
LANE = 128  # pad hidden to a multiple of this for lane-dense layout


def _lxmert_self_attn_kernel(
    x_ref,       # (1, S, Hp)   f32   hidden states for this batch element (zero-padded cols)
    mask_ref,    # (1, 1, S)    f32   additive key mask for this batch element
    wqkv_ref,    # (Hp, 3*Hp)   bf16  fused QKV weights, head-blocked columns, Q pre-scaled
    bqkv_ref,    # (1, 3*Hp)    f32   fused QKV bias (Q part pre-scaled)
    wo_ref,      # (Hp, Hp)     bf16  output-dense weights (rows = head-concat ctx dims)
    bo_ref,      # (1, Hp)      f32
    gamma_ref,   # (1, Hp)      f32   LayerNorm weight (zero in padded cols)
    beta_ref,    # (1, Hp)      f32   LayerNorm bias   (zero in padded cols)
    out_ref,     # (1, S, Hp)   f32
    *,
    num_heads: int,
    head_dim: int,
    hidden_real: int,
):
    x = x_ref[0]                                               # (S, Hp) f32
    hp = num_heads * head_dim                                  # padded hidden

    # --- fused, full-width QKV projection: one MXU matmul, bf16-in / f32-acc ---
    qkv = jnp.dot(x.astype(jnp.bfloat16), wqkv_ref[...],
                  preferred_element_type=jnp.float32) + bqkv_ref[...]      # (S, 3*Hp)

    def split_heads(t):  # (S, Hp) -> (NH, S, HD) via static lane slices (cheap relayout)
        return jnp.stack(
            [t[:, n * head_dim:(n + 1) * head_dim] for n in range(num_heads)], axis=0)

    qh = split_heads(qkv[:, :hp]).astype(jnp.bfloat16)         # (NH, S, HD) scale folded in
    kh = split_heads(qkv[:, hp:2 * hp]).astype(jnp.bfloat16)
    vh = split_heads(qkv[:, 2 * hp:]).astype(jnp.bfloat16)

    # --- head-batched attention scores + additive key mask (broadcast over heads/queries) ---
    s = jnp.einsum("nqd,nkd->nqk", qh, kh,
                   preferred_element_type=jnp.float32)         # (NH, S, S)
    s = s + mask_ref[0]                                        # (1, S) -> (NH, S, S)

    # --- numerically-stable softmax in f32; reciprocal on the EUP (approx) ---
    m = jnp.max(s, axis=-1, keepdims=True)
    p = jnp.exp(s - m)
    p = p * pl.reciprocal(jnp.sum(p, axis=-1, keepdims=True), approx=True)

    # --- context, head merge (single lane concat), full-width output projection ---
    ctx = jnp.einsum("nqk,nkd->nqd", p.astype(jnp.bfloat16), vh,
                     preferred_element_type=jnp.float32)       # (NH, S, HD)
    ctx2 = jnp.concatenate([ctx[n] for n in range(num_heads)], axis=-1)    # (S, Hp)
    attn = jnp.dot(ctx2.astype(jnp.bfloat16), wo_ref[...],
                   preferred_element_type=jnp.float32) + bo_ref[...]       # (S, Hp)

    # --- residual + LayerNorm over the REAL hidden columns only ---
    # Padded columns of x and attn are exactly zero, so sums over Hp == sums over H.
    y = attn + x
    inv_h = 1.0 / float(hidden_real)
    mu = jnp.sum(y, axis=-1, keepdims=True) * inv_h
    var = jnp.sum(y * y, axis=-1, keepdims=True) * inv_h - mu * mu
    yn = (y - mu) * jax.lax.rsqrt(var + LN_EPS)
    out_ref[0] = yn * gamma_ref[...] + beta_ref[...]


@functools.partial(jax.jit, static_argnames=("num_heads",))
def lxmert_self_attention_layer(x, mask, params, *, num_heads):
    """x: [B, S, H] f32; mask: [B, S] additive key mask; params: dict of weights.

    Weights are stored as [in, out] (transposed w.r.t. PyTorch's [out, in]); biases as [1, H].
    """
    B, S, H = x.shape
    assert H % num_heads == 0, "hidden size must be divisible by num_heads"
    assert params["wq"].shape == (H, H), "param hidden size mismatch with input"
    hd = H // num_heads
    scale = 1.0 / math.sqrt(hd)

    # Lane-dense padded sizes (padded head/hidden columns carry zero weights & biases).
    Hp = ((H + LANE - 1) // LANE) * LANE
    assert Hp % num_heads == 0, "padded hidden must stay divisible by num_heads"
    hdp = Hp // num_heads

    # --- host-side (tiny, one-shot) parameter preparation ---
    def pad_proj_w(w, s=1.0):   # (H, H) [in, out] -> (Hp, Hp), head-blocked output cols
        w3 = (w * s).reshape(H, num_heads, hd)
        w3 = jnp.pad(w3, ((0, Hp - H), (0, 0), (0, hdp - hd)))
        return w3.reshape(Hp, Hp)

    def pad_proj_b(b, s=1.0):   # (1, H) -> (1, Hp), head-blocked
        b2 = (b * s).reshape(num_heads, hd)
        b2 = jnp.pad(b2, ((0, 0), (0, hdp - hd)))
        return b2.reshape(1, Hp)

    def pad_out_w(w):           # (H, H) [ctx-in, out] -> (Hp, Hp), head-blocked input rows
        w3 = w.reshape(num_heads, hd, H)
        w3 = jnp.pad(w3, ((0, 0), (0, hdp - hd), (0, Hp - H)))
        return w3.reshape(Hp, Hp)

    def pad_vec(b):             # (1, H) -> (1, Hp)
        return jnp.pad(b, ((0, 0), (0, Hp - H)))

    wqkv = jnp.concatenate(
        [pad_proj_w(params["wq"], scale), pad_proj_w(params["wk"]), pad_proj_w(params["wv"])],
        axis=1).astype(jnp.bfloat16)                                      # (Hp, 3*Hp)
    bqkv = jnp.concatenate(
        [pad_proj_b(params["bq"], scale), pad_proj_b(params["bk"]), pad_proj_b(params["bv"])],
        axis=1)                                                            # (1, 3*Hp)
    wo_p = pad_out_w(params["wo"]).astype(jnp.bfloat16)                    # (Hp, Hp)
    bo_p = pad_vec(params["bo"])
    gamma_p = pad_vec(params["gamma"])
    beta_p = pad_vec(params["beta"])

    x_p = jnp.pad(x, ((0, 0), (0, 0), (0, Hp - H)))                        # (B, S, Hp)
    mask3 = mask.reshape(B, 1, S)                                          # (B, 1, S)

    kernel = functools.partial(_lxmert_self_attn_kernel,
                               num_heads=num_heads, head_dim=hdp, hidden_real=H)

    out_p = pl.pallas_call(
        kernel,
        out_shape=jax.ShapeDtypeStruct((B, S, Hp), jnp.float32),
        grid=(B,),
        in_specs=[
            pl.BlockSpec((1, S, Hp), lambda b: (b, 0, 0)),        # x (per batch element)
            pl.BlockSpec((1, 1, S), lambda b: (b, 0, 0)),         # additive key mask
            pl.BlockSpec((Hp, 3 * Hp), lambda b: (0, 0)),         # wqkv (VMEM-resident)
            pl.BlockSpec((1, 3 * Hp), lambda b: (0, 0)),          # bqkv
            pl.BlockSpec((Hp, Hp), lambda b: (0, 0)),             # wo
            pl.BlockSpec((1, Hp), lambda b: (0, 0)),              # bo
            pl.BlockSpec((1, Hp), lambda b: (0, 0)),              # gamma
            pl.BlockSpec((1, Hp), lambda b: (0, 0)),              # beta
        ],
        out_specs=pl.BlockSpec((1, S, Hp), lambda b: (b, 0, 0)),
        compiler_params=pltpu.CompilerParams(
            dimension_semantics=("parallel",),                    # megacore split on v7x
        ),
    )(x_p, mask3, wqkv, bqkv, wo_p, bo_p, gamma_p, beta_p)

    return out_p[:, :, :H]


def _reference(x, mask, params, num_heads):
    """Pure-JAX reference replicating the PyTorch forward (eval mode)."""
    B, S, H = x.shape
    hd = H // num_heads
    q = x @ params["wq"] + params["bq"][0]
    k = x @ params["wk"] + params["bk"][0]
    v = x @ params["wv"] + params["bv"][0]

    def split(t):  # [B,S,H] -> [B,nh,S,hd]
        return t.reshape(B, S, num_heads, hd).transpose(0, 2, 1, 3)

    qh, kh, vh = split(q), split(k), split(v)
    scores = jnp.einsum("bnqd,bnkd->bnqk", qh, kh) / math.sqrt(hd)
    scores = scores + mask[:, None, None, :]
    probs = jax.nn.softmax(scores, axis=-1)
    ctx = jnp.einsum("bnqk,bnkd->bnqd", probs, vh)
    ctx = ctx.transpose(0, 2, 1, 3).reshape(B, S, H)
    out = ctx @ params["wo"] + params["bo"][0]
    y = out + x
    mu = jnp.mean(y, axis=-1, keepdims=True)
    var = jnp.mean((y - mu) ** 2, axis=-1, keepdims=True)
    yn = (y - mu) / jnp.sqrt(var + LN_EPS)
    return yn * params["gamma"][0] + params["beta"][0]


def _init_params(key):
    ks = jax.random.split(key, 8)
    scale = 0.02
    # Linear weights stored as [in, out] (already transposed relative to PyTorch's [out, in]).
    return {
        "wq": scale * jax.random.normal(ks[0], (HIDDEN, HIDDEN), jnp.float32),
        "bq": scale * jax.random.normal(ks[1], (1, HIDDEN), jnp.float32),
        "wk": scale * jax.random.normal(ks[2], (HIDDEN, HIDDEN), jnp.float32),
        "bk": scale * jax.random.normal(ks[3], (1, HIDDEN), jnp.float32),
        "wv": scale * jax.random.normal(ks[4], (HIDDEN, HIDDEN), jnp.float32),
        "bv": scale * jax.random.normal(ks[5], (1, HIDDEN), jnp.float32),
        "wo": scale * jax.random.normal(ks[6], (HIDDEN, HIDDEN), jnp.float32),
        "bo": scale * jax.random.normal(ks[7], (1, HIDDEN), jnp.float32),
        "gamma": jnp.ones((1, HIDDEN), jnp.float32),
        "beta": jnp.zeros((1, HIDDEN), jnp.float32),
    }


if __name__ == "__main__":
    key = jax.random.PRNGKey(0)
    k_x, k_m, k_p = jax.random.split(key, 3)

    x = jax.random.normal(k_x, (BATCH, SEQ, HIDDEN), jnp.float32)
    # Additive extended attention mask: 0 for attended positions, -10000 for masked.
    mask_bits = (jax.random.uniform(k_m, (BATCH, SEQ)) > 0.25).astype(jnp.float32)
    mask = (1.0 - mask_bits) * -10000.0

    params = _init_params(k_p)

    out = lxmert_self_attention_layer(x, mask, params, num_heads=NUM_HEADS)
    out = jax.block_until_ready(out)

    ref = _reference(x, mask, params, NUM_HEADS)
    assert out.shape == ref.shape
    # 5e-3 tolerance: bf16 matmul operands (f32 accumulation) + approx EUP reciprocal.
    assert jnp.allclose(out, ref, atol=5e-3, rtol=5e-3), "mismatch vs pure-JAX reference"

    print("KERNEL_OK")
</pallas_src>

<mosaic_0001>
module attributes {stable_mosaic.version = 11 : i64} {
  func.func @_lxmert_self_attn_kernel(%arg0: i32, %arg1: memref<1x8x128xf32, #tpu.memory_space<vmem>>, %arg2: memref<1x1x8xf32, #tpu.memory_space<vmem>>, %arg3: memref<128x384xbf16, #tpu.memory_space<vmem>>, %arg4: memref<1x384xf32, #tpu.memory_space<vmem>>, %arg5: memref<128x128xbf16, #tpu.memory_space<vmem>>, %arg6: memref<1x128xf32, #tpu.memory_space<vmem>>, %arg7: memref<1x128xf32, #tpu.memory_space<vmem>>, %arg8: memref<1x128xf32, #tpu.memory_space<vmem>>, %arg9: memref<1x8x128xf32, #tpu.memory_space<vmem>>) attributes {dimension_semantics = [#tpu.dimension_semantics<parallel>], iteration_bounds = array<i64: 2>, scalar_prefetch = 0 : i64, scratch_operands = 0 : i64, tpu.core_type = #tpu.core_type<tc>, window_params = [{transform_indices = @transform_0, window_bounds = array<i64: 1, 8, 128>}, {transform_indices = @transform_1, window_bounds = array<i64: 1, 1, 8>}, {pipeline_mode = #tpu.pipeline_mode<synchronous>, transform_indices = @transform_2, window_bounds = array<i64: 128, 384>}, {pipeline_mode = #tpu.pipeline_mode<synchronous>, transform_indices = @transform_3, window_bounds = array<i64: 1, 384>}, {pipeline_mode = #tpu.pipeline_mode<synchronous>, transform_indices = @transform_4, window_bounds = array<i64: 128, 128>}, {pipeline_mode = #tpu.pipeline_mode<synchronous>, transform_indices = @transform_5, window_bounds = array<i64: 1, 128>}, {pipeline_mode = #tpu.pipeline_mode<synchronous>, transform_indices = @transform_6, window_bounds = array<i64: 1, 128>}, {pipeline_mode = #tpu.pipeline_mode<synchronous>, transform_indices = @transform_7, window_bounds = array<i64: 1, 128>}, {transform_indices = @transform_8, window_bounds = array<i64: 1, 8, 128>}]} {
    %c0 = arith.constant 0 : index
    %c0_0 = arith.constant 0 : index
    %c0_1 = arith.constant 0 : index
    %0 = vector.load %arg1[%c0, %c0_0, %c0_1] : memref<1x8x128xf32, #tpu.memory_space<vmem>>, vector<1x8x128xf32>
    %1 = vector.shape_cast %0 : vector<1x8x128xf32> to vector<8x128xf32>
    %2 = arith.truncf %1 : vector<8x128xf32> to vector<8x128xbf16>
    %c0_2 = arith.constant 0 : index
    %c0_3 = arith.constant 0 : index
    %3 = vector.load %arg3[%c0_2, %c0_3] : memref<128x384xbf16, #tpu.memory_space<vmem>>, vector<128x384xbf16>
    %cst = arith.constant dense<0.000000e+00> : vector<8x384xf32>
    %4 = tpu.matmul %2, %3, %cst {dimension_numbers = #tpu.dot_dimension_numbers<[1], [0], [0], [1], [0, 0, 1, 1], [], []>} : vector<8x128xbf16>, vector<128x384xbf16>, vector<8x384xf32> -> vector<8x384xf32>
    %c0_4 = arith.constant 0 : index
    %c0_5 = arith.constant 0 : index
    %5 = vector.load %arg4[%c0_4, %c0_5] : memref<1x384xf32, #tpu.memory_space<vmem>>, vector<1x384xf32>
    %6 = vector.broadcast %5 : vector<1x384xf32> to vector<8x384xf32>
    %7 = arith.addf %4, %6 : vector<8x384xf32>
    %8 = vector.extract_strided_slice %7 {offsets = [0, 0], sizes = [8, 128], strides = [1, 1]} : vector<8x384xf32> to vector<8x128xf32>
    %9 = vector.extract_strided_slice %8 {offsets = [0, 0], sizes = [8, 32], strides = [1, 1]} : vector<8x128xf32> to vector<8x32xf32>
    %10 = vector.extract_strided_slice %8 {offsets = [0, 32], sizes = [8, 32], strides = [1, 1]} : vector<8x128xf32> to vector<8x32xf32>
    %11 = vector.extract_strided_slice %8 {offsets = [0, 64], sizes = [8, 32], strides = [1, 1]} : vector<8x128xf32> to vector<8x32xf32>
    %12 = vector.extract_strided_slice %8 {offsets = [0, 96], sizes = [8, 32], strides = [1, 1]} : vector<8x128xf32> to vector<8x32xf32>
    %13 = vector.shape_cast %9 : vector<8x32xf32> to vector<1x8x32xf32>
    %14 = vector.shape_cast %10 : vector<8x32xf32> to vector<1x8x32xf32>
    %15 = vector.shape_cast %11 : vector<8x32xf32> to vector<1x8x32xf32>
    %16 = vector.shape_cast %12 : vector<8x32xf32> to vector<1x8x32xf32>
    %17 = tpu.concatenate %13, %14, %15, %16 in 0 : vector<1x8x32xf32>, vector<1x8x32xf32>, vector<1x8x32xf32>, vector<1x8x32xf32> -> vector<4x8x32xf32>
    %18 = arith.truncf %17 : vector<4x8x32xf32> to vector<4x8x32xbf16>
    %19 = vector.extract_strided_slice %7 {offsets = [0, 128], sizes = [8, 128], strides = [1, 1]} : vector<8x384xf32> to vector<8x128xf32>
    %20 = vector.extract_strided_slice %19 {offsets = [0, 0], sizes = [8, 32], strides = [1, 1]} : vector<8x128xf32> to vector<8x32xf32>
    %21 = vector.extract_strided_slice %19 {offsets = [0, 32], sizes = [8, 32], strides = [1, 1]} : vector<8x128xf32> to vector<8x32xf32>
    %22 = vector.extract_strided_slice %19 {offsets = [0, 64], sizes = [8, 32], strides = [1, 1]} : vector<8x128xf32> to vector<8x32xf32>
    %23 = vector.extract_strided_slice %19 {offsets = [0, 96], sizes = [8, 32], strides = [1, 1]} : vector<8x128xf32> to vector<8x32xf32>
    %24 = vector.shape_cast %20 : vector<8x32xf32> to vector<1x8x32xf32>
    %25 = vector.shape_cast %21 : vector<8x32xf32> to vector<1x8x32xf32>
    %26 = vector.shape_cast %22 : vector<8x32xf32> to vector<1x8x32xf32>
    %27 = vector.shape_cast %23 : vector<8x32xf32> to vector<1x8x32xf32>
    %28 = tpu.concatenate %24, %25, %26, %27 in 0 : vector<1x8x32xf32>, vector<1x8x32xf32>, vector<1x8x32xf32>, vector<1x8x32xf32> -> vector<4x8x32xf32>
    %29 = arith.truncf %28 : vector<4x8x32xf32> to vector<4x8x32xbf16>
    %30 = vector.extract_strided_slice %7 {offsets = [0, 256], sizes = [8, 128], strides = [1, 1]} : vector<8x384xf32> to vector<8x128xf32>
    %31 = vector.extract_strided_slice %30 {offsets = [0, 0], sizes = [8, 32], strides = [1, 1]} : vector<8x128xf32> to vector<8x32xf32>
    %32 = vector.extract_strided_slice %30 {offsets = [0, 32], sizes = [8, 32], strides = [1, 1]} : vector<8x128xf32> to vector<8x32xf32>
    %33 = vector.extract_strided_slice %30 {offsets = [0, 64], sizes = [8, 32], strides = [1, 1]} : vector<8x128xf32> to vector<8x32xf32>
    %34 = vector.extract_strided_slice %30 {offsets = [0, 96], sizes = [8, 32], strides = [1, 1]} : vector<8x128xf32> to vector<8x32xf32>
    %35 = vector.shape_cast %31 : vector<8x32xf32> to vector<1x8x32xf32>
    %36 = vector.shape_cast %32 : vector<8x32xf32> to vector<1x8x32xf32>
    %37 = vector.shape_cast %33 : vector<8x32xf32> to vector<1x8x32xf32>
    %38 = vector.shape_cast %34 : vector<8x32xf32> to vector<1x8x32xf32>
    %39 = tpu.concatenate %35, %36, %37, %38 in 0 : vector<1x8x32xf32>, vector<1x8x32xf32>, vector<1x8x32xf32>, vector<1x8x32xf32> -> vector<4x8x32xf32>
    %40 = arith.truncf %39 : vector<4x8x32xf32> to vector<4x8x32xbf16>
    "tpu.trace_start"() <{level = 10 : i32, message = "nqd,nkd->nqk"}> : () -> ()
    %cst_6 = arith.constant dense<0.000000e+00> : vector<4x8x8xf32>
    %41 = tpu.matmul %18, %29, %cst_6 {dimension_numbers = #tpu.dot_dimension_numbers<[2], [2], [1], [1], [0, 0, 0, 1, 1, 1], [0], [0]>} : vector<4x8x32xbf16>, vector<4x8x32xbf16>, vector<4x8x8xf32> -> vector<4x8x8xf32>
    "tpu.trace_stop"() : () -> ()
    %c0_7 = arith.constant 0 : index
    %c0_8 = arith.constant 0 : index
    %c0_9 = arith.constant 0 : index
    %42 = vector.load %arg2[%c0_7, %c0_8, %c0_9] : memref<1x1x8xf32, #tpu.memory_space<vmem>>, vector<1x1x8xf32>
    %43 = vector.shape_cast %42 : vector<1x1x8xf32> to vector<1x8xf32>
    %44 = vector.shape_cast %43 : vector<1x8xf32> to vector<1x1x8xf32>
    %45 = vector.broadcast %44 : vector<1x1x8xf32> to vector<4x8x8xf32>
    %46 = arith.addf %41, %45 : vector<4x8x8xf32>
    %cst_10 = arith.constant dense<0xFF800000> : vector<4x8xf32>
    %47 = vector.multi_reduction <maximumf>, %46, %cst_10 [2] : vector<4x8x8xf32> to vector<4x8xf32>
    %48 = vector.shape_cast %47 : vector<4x8xf32> to vector<4x8x1xf32>
    %49 = vector.broadcast %48 : vector<4x8x1xf32> to vector<4x8x8xf32>
    %50 = arith.subf %46, %49 : vector<4x8x8xf32>
    %51 = math.exp %50 : vector<4x8x8xf32>
    %cst_11 = arith.constant dense<0.000000e+00> : vector<4x8xf32>
    %52 = vector.multi_reduction <add>, %51, %cst_11 [2] : vector<4x8x8xf32> to vector<4x8xf32>
    %53 = vector.shape_cast %52 : vector<4x8xf32> to vector<4x8x1xf32>
    %54 = tpu.reciprocal %53 {approx = true} : vector<4x8x1xf32> -> vector<4x8x1xf32>
    %55 = vector.broadcast %54 : vector<4x8x1xf32> to vector<4x8x8xf32>
    %56 = arith.mulf %51, %55 : vector<4x8x8xf32>
    %57 = arith.truncf %56 : vector<4x8x8xf32> to vector<4x8x8xbf16>
    "tpu.trace_start"() <{level = 10 : i32, message = "nqk,nkd->nqd"}> : () -> ()
    %cst_12 = arith.constant dense<0.000000e+00> : vector<4x8x32xf32>
    %58 = tpu.matmul %57, %40, %cst_12 {dimension_numbers = #tpu.dot_dimension_numbers<[2], [1], [1], [2], [0, 0, 0, 1, 1, 2], [0], [0]>} : vector<4x8x8xbf16>, vector<4x8x32xbf16>, vector<4x8x32xf32> -> vector<4x8x32xf32>
    "tpu.trace_stop"() : () -> ()
    %59 = vector.extract_strided_slice %58 {offsets = [0, 0, 0], sizes = [1, 8, 32], strides = [1, 1, 1]} : vector<4x8x32xf32> to vector<1x8x32xf32>
    %60 = vector.shape_cast %59 : vector<1x8x32xf32> to vector<8x32xf32>
    %61 = vector.extract_strided_slice %58 {offsets = [1, 0, 0], sizes = [1, 8, 32], strides = [1, 1, 1]} : vector<4x8x32xf32> to vector<1x8x32xf32>
    %62 = vector.shape_cast %61 : vector<1x8x32xf32> to vector<8x32xf32>
    %63 = vector.extract_strided_slice %58 {offsets = [2, 0, 0], sizes = [1, 8, 32], strides = [1, 1, 1]} : vector<4x8x32xf32> to vector<1x8x32xf32>
    %64 = vector.shape_cast %63 : vector<1x8x32xf32> to vector<8x32xf32>
    %65 = vector.extract_strided_slice %58 {offsets = [3, 0, 0], sizes = [1, 8, 32], strides = [1, 1, 1]} : vector<4x8x32xf32> to vector<1x8x32xf32>
    %66 = vector.shape_cast %65 : vector<1x8x32xf32> to vector<8x32xf32>
    %67 = tpu.concatenate %60, %62, %64, %66 in 1 : vector<8x32xf32>, vector<8x32xf32>, vector<8x32xf32>, vector<8x32xf32> -> vector<8x128xf32>
    %68 = arith.truncf %67 : vector<8x128xf32> to vector<8x128xbf16>
    %c0_13 = arith.constant 0 : index
    %c0_14 = arith.constant 0 : index
    %69 = vector.load %arg5[%c0_13, %c0_14] : memref<128x128xbf16, #tpu.memory_space<vmem>>, vector<128x128xbf16>
    %cst_15 = arith.constant dense<0.000000e+00> : vector<8x128xf32>
    %70 = tpu.matmul %68, %69, %cst_15 {dimension_numbers = #tpu.dot_dimension_numbers<[1], [0], [0], [1], [0, 0, 1, 1], [], []>} : vector<8x128xbf16>, vector<128x128xbf16>, vector<8x128xf32> -> vector<8x128xf32>
    %c0_16 = arith.constant 0 : index
    %c0_17 = arith.constant 0 : index
    %71 = vector.load %arg6[%c0_16, %c0_17] : memref<1x128xf32, #tpu.memory_space<vmem>>, vector<1x128xf32>
    %72 = vector.broadcast %71 : vector<1x128xf32> to vector<8x128xf32>
    %73 = arith.addf %70, %72 : vector<8x128xf32>
    %74 = arith.addf %73, %1 : vector<8x128xf32>
    %cst_18 = arith.constant dense<0.000000e+00> : vector<8xf32>
    %75 = vector.multi_reduction <add>, %74, %cst_18 [1] : vector<8x128xf32> to vector<8xf32>
    %76 = vector.shape_cast %75 : vector<8xf32> to vector<8x1xf32>
    %cst_19 = arith.constant 3.125000e-02 : f32
    %77 = vector.broadcast %cst_19 : f32 to vector<8x1xf32>
    %78 = arith.mulf %76, %77 : vector<8x1xf32>
    %79 = arith.mulf %74, %74 : vector<8x128xf32>
    %cst_20 = arith.constant dense<0.000000e+00> : vector<8xf32>
    %80 = vector.multi_reduction <add>, %79, %cst_20 [1] : vector<8x128xf32> to vector<8xf32>
    %81 = vector.shape_cast %80 : vector<8xf32> to vector<8x1xf32>
    %cst_21 = arith.constant 3.125000e-02 : f32
    %82 = vector.broadcast %cst_21 : f32 to vector<8x1xf32>
    %83 = arith.mulf %81, %82 : vector<8x1xf32>
    %84 = arith.mulf %78, %78 : vector<8x1xf32>
    %85 = arith.subf %83, %84 : vector<8x1xf32>
    %86 = vector.broadcast %78 : vector<8x1xf32> to vector<8x128xf32>
    %87 = arith.subf %74, %86 : vector<8x128xf32>
    %cst_22 = arith.constant 9.99999996E-13 : f32
    %88 = vector.broadcast %cst_22 : f32 to vector<8x1xf32>
    %89 = arith.addf %85, %88 : vector<8x1xf32>
    %90 = math.rsqrt %89 : vector<8x1xf32>
    %91 = vector.broadcast %90 : vector<8x1xf32> to vector<8x128xf32>
    %92 = arith.mulf %87, %91 : vector<8x128xf32>
    %c0_23 = arith.constant 0 : index
    %c0_24 = arith.constant 0 : index
    %93 = vector.load %arg7[%c0_23, %c0_24] : memref<1x128xf32, #tpu.memory_space<vmem>>, vector<1x128xf32>
    %94 = vector.broadcast %93 : vector<1x128xf32> to vector<8x128xf32>
    %95 = arith.mulf %92, %94 : vector<8x128xf32>
    %c0_25 = arith.constant 0 : index
    %c0_26 = arith.constant 0 : index
    %96 = vector.load %arg8[%c0_25, %c0_26] : memref<1x128xf32, #tpu.memory_space<vmem>>, vector<1x128xf32>
    %97 = vector.broadcast %96 : vector<1x128xf32> to vector<8x128xf32>
    %98 = arith.addf %95, %97 : vector<8x128xf32>
    %c0_27 = arith.constant 0 : index
    %c0_28 = arith.constant 0 : index
    %c0_29 = arith.constant 0 : index
    %99 = vector.load %arg9[%c0_27, %c0_28, %c0_29] : memref<1x8x128xf32, #tpu.memory_space<vmem>>, vector<1x8x128xf32>
    %100 = vector.shape_cast %99 : vector<1x8x128xf32> to vector<8x128xf32>
    %101 = vector.shape_cast %98 : vector<8x128xf32> to vector<1x8x128xf32>
    tpu.vector_store %arg9[%c0_27, %c0_28, %c0_29], %101 {strides = array<i32>} : memref<1x8x128xf32, #tpu.memory_space<vmem>>, vector<1x8x128xf32>,
    return
  }
  func.func @transform_0(%arg0: i32) -> (i32, i32, i32) {
    %c0_i32 = arith.constant 0 : i32
    %c0_i32_0 = arith.constant 0 : i32
    %c0_i32_1 = arith.constant 0 : i32
    return %arg0, %c0_i32, %c0_i32_0 : i32, i32, i32
  }
  func.func @transform_1(%arg0: i32) -> (i32, i32, i32) {
    %c0_i32 = arith.constant 0 : i32
    %c0_i32_0 = arith.constant 0 : i32
    %c0_i32_1 = arith.constant 0 : i32
    return %arg0, %c0_i32, %c0_i32_0 : i32, i32, i32
  }
  func.func @transform_2(%arg0: i32) -> (i32, i32) {
    %c0_i32 = arith.constant 0 : i32
    %c0_i32_0 = arith.constant 0 : i32
    %c0_i32_1 = arith.constant 0 : i32
    return %c0_i32, %c0_i32_0 : i32, i32
  }
  func.func @transform_3(%arg0: i32) -> (i32, i32) {
    %c0_i32 = arith.constant 0 : i32
    %c0_i32_0 = arith.constant 0 : i32
    %c0_i32_1 = arith.constant 0 : i32
    return %c0_i32, %c0_i32_0 : i32, i32
  }
  func.func @transform_4(%arg0: i32) -> (i32, i32) {
    %c0_i32 = arith.constant 0 : i32
    %c0_i32_0 = arith.constant 0 : i32
    %c0_i32_1 = arith.constant 0 : i32
    return %c0_i32, %c0_i32_0 : i32, i32
  }
  func.func @transform_5(%arg0: i32) -> (i32, i32) {
    %c0_i32 = arith.constant 0 : i32
    %c0_i32_0 = arith.constant 0 : i32
    %c0_i32_1 = arith.constant 0 : i32
    return %c0_i32, %c0_i32_0 : i32, i32
  }
  func.func @transform_6(%arg0: i32) -> (i32, i32) {
    %c0_i32 = arith.constant 0 : i32
    %c0_i32_0 = arith.constant 0 : i32
    %c0_i32_1 = arith.constant 0 : i32
    return %c0_i32, %c0_i32_0 : i32, i32
  }
  func.func @transform_7(%arg0: i32) -> (i32, i32) {
    %c0_i32 = arith.constant 0 : i32
    %c0_i32_0 = arith.constant 0 : i32
    %c0_i32_1 = arith.constant 0 : i32
    return %c0_i32, %c0_i32_0 : i32, i32
  }
  func.func @transform_8(%arg0: i32) -> (i32, i32, i32) {
    %c0_i32 = arith.constant 0 : i32
    %c0_i32_0 = arith.constant 0 : i32
    %c0_i32_1 = arith.constant 0 : i32
    return %arg0, %c0_i32, %c0_i32_0 : i32, i32, i32
  }
}

</mosaic_0001>

<bundles_post_ra>
// kernel: lxmert_self_attention_layer.1
= control target key start
LH: loop header
LB: loop body
LE: loop exit
PB: predicated region body
PF: predicated region fallthrough
CT: control target
= control target key end

     0   :  { %s1974_s0 = inlined_call_operand.vmem [shape: f32[2,8,128], index: 0, kind: input, shape index: {}]   ;;  %s1975_s1 = inlined_call_operand.vmem [shape: f32[2,1,8], index: 1, kind: input, shape index: {}]   ;;  %s1976_s2 = inlined_call_operand.vmem [shape: bf16[128,384], index: 2, kind: input, shape index: {}]   ;;  %s1977_s3 = inlined_call_operand.vmem [shape: f32[1,384], index: 3, kind: input, shape index: {}]   ;;  %s1978_s4 = inlined_call_operand.vmem [shape: bf16[128,128], index: 4, kind: input, shape index: {}]   ;;  %s1979_s5 = inlined_call_operand.vmem [shape: f32[1,128], index: 5, kind: input, shape index: {}]   ;;  %s1980_s6 = inlined_call_operand.vmem [shape: f32[1,128], index: 6, kind: input, shape index: {}]   ;;  %s1981_s7 = inlined_call_operand.vmem [shape: f32[1,128], index: 7, kind: input, shape index: {}]   ;;  %s1982_s8 = inlined_call_operand.hbm [shape: f32[2,8,128], index: 8, kind: output, shape index: {}]  }
   0x1   :  { %1983 = sst [smem:[#allocation5_spill]] %s1974_s0 }
   0x2   :  { %13 = vsyncpa [#allocation3], 0 }
   0x3   :  { %15 = vsyncpa [#allocation3 + $0x1], 0  ;;  %s1679_s27 = smov 0   ;;  %s1681_s28 = smov 0  }
   0x4   :  { %s1683_s29 = smov 0   ;;  %s1685_s30 = smov 0  }
   0x5 LB: > { %s1700_s9 = sadd.s32 4294967295, %s1625_s30   ;;  %s1286_s10 = sadd.s32 4294967294, %s1625_s30   ;;  %s1625_s30 = sphi %s1685_s30, %s1990_s30   ;;  %s1621_s29 = sphi %s1683_s29, %s1989_s29   ;;  %s1617_s28 = sphi %s1681_s28, %s1988_s28   ;;  %s1613_s27 = sphi %s1679_s27, %s1987_s27  }
   0x6   : > { %s1704_s11 = sadd.s32 1, %s1625_s30   ;;  %s206_s12 = sadd.s32 1, %s1621_s29 }
   0x7   : > { %s203_s13 = ssub.s32 %s1625_s30, %s1704_s11  ;;  %p216_p0 = scmp.ne.s32.totalorder %s1621_s29, %s1617_s28 }
   0x8   : > { %p204_p1 = scmp.eq.s32.totalorder %s203_s13, 0  ;;  %p217_p2 = scmp.eq.s32.totalorder %s1700_s9, 1 }
   0x9   : > { %p222_p3 = scmp.ne.s32.totalorder %s1617_s28, %s1613_s27  ;;  %p223_p4 = scmp.eq.s32.totalorder %s1286_s10, 1 }
   0xa   : > { %s1715_s14 = scalar_select %p204_p1, %s1621_s29, %s206_s12  }
   0xb   : > { %p1717_p5 = por %p217_p2, %p216_p0  ;;  %p1721_p6 = por %p223_p4, %p222_p3 }
   0xc   : > { %p1289_p7 = scmp.ge.s32.totalorder %s1625_s30, 1  ;;  %p272_p8 = scmp.lt.s32.totalorder %s1625_s30, 3 }
   0xe   : > { %p273_p9 = pnand %p1289_p7, %p272_p8 }
   0xf   : > { %p308_p10 = scmp.lt.s32.totalorder (!%p273_p9), %s1700_s9, 1  ;;  %s1986_s0 = sld [smem:[#allocation5_spill]] (!%p273_p9) }
  0x10   : > { %276 = sbr.rel (%p273_p9) target bundleno = 1588 (0x634), region = 52  ;;  %s1630_s24 = smov (!%p273_p9), 64  }
  0x11   : > { %s1631_s25 = smov (!%p273_p9), 96   ;;  %s1632_s26 = smov (!%p273_p9), 32  }
  0x12   : > { %s1633_s12 = smov (!%p273_p9), [#allocation2]  }
  0x13   : > { %s1569_s13 = sshll.u32 (!%p273_p9), %s1633_s12, 4  ;;  %s1570_s13 = int_to_ptr.vmem [resolvable:$false] %s1569_s13 }
  0x15   : > { %v1507_v0 = vld [vmem:[%s1976_s2 + $0xac] ss:$12 sps:$4 sm:$0xff]   ;;  %v1509_v1 = vld [vmem:[%s1976_s2 + $0xa8] ss:$12 sps:$4 sm:$0xff]   ;;  %v1627_v2 = vmov 0   ;;  %v1628_v4 = vmov 0.0   ;;  %v352_v28 = vlaneseq }
  0x16   : > { %527 = vmatprep.mubr.bf16.mxu0 %v1627_v2  ;;  %495 = vmatprep.subr.bf16.mxu0 %v1507_v0  ;;  %v1510_v3 = vld [vmem:[%s1976_s2 + $0x94] ss:$12 sps:$4 sm:$0xff]   ;;  %v1512_v5 = vld [vmem:[%s1976_s2 + $0x90] ss:$12 sps:$4 sm:$0xff]   ;;  %v1515_v7 = vld [vmem:[%s1976_s2 + $0x78] ss:$12 sps:$4 sm:$0xff]  }
  0x17   : > { %1374 = vmatprep.subr.bf16.mxu1 %v1628_v4  ;;  %496 = vmatpush1.bf16.msra.mxu0 %v1509_v1  ;;  %v1513_v6 = vld [vmem:[%s1976_s2 + $0x7c] ss:$12 sps:$4 sm:$0xff]   ;;  %v1516_v8 = vld [vmem:[%s1976_s2 + $0x64] ss:$12 sps:$4 sm:$0xff]   ;;  %v1518_v9 = vld [vmem:[%s1976_s2 + $0x60] ss:$12 sps:$4 sm:$0xff]  }
  0x18   : > { %497 = vmatprep.subr.bf16.mxu0 %v1510_v3  ;;  %s1754_s20 = scalar_select %p308_p10, %s1700_s9, 1  ;;  %v1531_v10 = vld [vmem:[%s1976_s2 + $0xb0] ss:$12 sps:$4 sm:$0xff]   ;;  %v1519_v11 = vld [vmem:[%s1976_s2 + $0x4c] ss:$12 sps:$4 sm:$0xff]   ;;  %vm1629_vm0 = vmmov 0  }
  0x19   : > { %1375 = vmatpush3.bf16.msra.mxu1 %v1531_v10  ;;  %v1532_v12 = vld [vmem:[%s1976_s2 + $0x98] ss:$12 sps:$4 sm:$0xff]   ;;  %v1521_v13 = vld [vmem:[%s1976_s2 + $0x48] ss:$12 sps:$4 sm:$0xff]   ;;  %v1524_v15 = vld [vmem:[%s1976_s2 + $0x30] ss:$12 sps:$4 sm:$0xff]   ;;  %1390 = vmatprep.mubr.msk.bf16.mxu1 %vm1629_vm0, %v1628_v4 }
  0x1a   : > { %s1291_s10 = sshll.u32 %s1754_s20, 3  ;;  %1376 = vmatprep.subr.bf16.mxu1 %v1628_v4  ;;  %v1522_v14 = vld [vmem:[%s1976_s2 + $0x34] ss:$12 sps:$4 sm:$0xff]   ;;  %v1525_v17 = vld [vmem:[%s1976_s2 + $0x1c] ss:$12 sps:$4 sm:$0xff]   ;;  %v353_v29 = vshrl.u32 %v352_v28, 7  ;;  %s314_s17 = scalar_lea.vmem %s1975_s1, %s1754_s20 }
  0x1b   : > { %498 = vmatpush1.bf16.msra.mxu0 %v1512_v5  ;;  %v1533_v16 = vld [vmem:[%s1976_s2 + $0x80] ss:$12 sps:$4 sm:$0xff]   ;;  %v1534_v18 = vld [vmem:[%s1976_s2 + $0x68] ss:$12 sps:$4 sm:$0xff]   ;;  %v1527_v19 = vld [vmem:[%s1976_s2 + $0x18] ss:$12 sps:$4 sm:$0xff]   ;;  %s311_s23 = scalar_lea.vmem %s1986_s0, %s1291_s10 }
  0x1c   : > { %499 = vmatprep.subr.bf16.mxu0 %v1513_v6  ;;  %v1528_v20 = vld [vmem:[%s1976_s2 + $0x4] ss:$12 sps:$4 sm:$0xff]   ;;  %v1530_v22 = vld [vmem:[%s1976_s2] ss:$12 sps:$4 sm:$0xff]   ;;  %v1538_v27 = vld [vmem:[%s1976_s2 + $0x8] ss:$12 sps:$4 sm:$0xff]  }
  0x1d   : > { %1377 = vmatpush3.bf16.msra.mxu1 %v1532_v12  ;;  %v1535_v21 = vld [vmem:[%s1976_s2 + $0x50] ss:$12 sps:$4 sm:$0xff]   ;;  %v1803_v23 = vld [vmem:[%s311_s23] sm:$0xff]  ;;  %v358_v30 = vsub.s32 1, %v353_v29  ;;  %v354_v32 = vsub.s32 0, %v353_v29  ;;  %vm625_vm1 = vcmask 261120  }
  0x1e   : > { %1378 = vmatprep.subr.bf16.mxu1 %v1628_v4  ;;  %v1536_v24 = vld [vmem:[%s1976_s2 + $0x38] ss:$12 sps:$4 sm:$0xff]   ;;  %v317_v25 = vpack.c.bf16 %v1803_v23, %v1803_v23  ;;  %v1537_v26 = vld [vmem:[%s1976_s2 + $0x20] ss:$12 sps:$4 sm:$0xff]   ;;  %v362_v45 = vsub.s32 2, %v353_v29  ;;  %vm862_vm2 = vcmask 1043456  }
  0x1f   : > { %500 = vmatpush1.bf16.msra.mxu0 %v1515_v7  ;;  %v350_v31 = vld [vmem:[%s1977_s3] sm:$0x7]  ;;  %vm810_vm3 = vcmask 64512   ;;  %vm1057_vm4 = vcmask 523264   ;;  %vm1059_vm5 = vcmask 785408   ;;  %s1337_s10 = sshll.u32 %s1700_s9, 7 }
  0x20   : > { %501 = vmatprep.subr.bf16.mxu0 %v1516_v8  ;;  %v359_v33 = vrot.slane %v350_v31, %v358_v30  ;;  %v355_v36 = vrot.slane %v350_v31, %v354_v32  ;;  %v363_v48 = vrot.slane %v350_v31, %v362_v45  ;;  %v1316_v5 = vld [vmem:[%s314_s17] ss:$0 sm:$0xff]  ;;  %s1571_s9 = scalar_lea.vmem %s1570_s13, 256 }
  0x21   : > { %1379 = vmatpush3.bf16.msra.mxu1 %v1533_v16 }
  0x22   : > { %1380 = vmatprep.subr.bf16.mxu1 %v1628_v4 }
  0x23   : > { %502 = vmatpush1.bf16.msra.mxu0 %v1518_v9 }
  0x24   : > { %503 = vmatprep.subr.bf16.mxu0 %v1519_v11 }
  0x25   : > { %1381 = vmatpush3.bf16.msra.mxu1 %v1534_v18 }
  0x26   : > { %1382 = vmatprep.subr.bf16.mxu1 %v1628_v4 }
  0x27   : > { %504 = vmatpush1.bf16.msra.mxu0 %v1521_v13 }
  0x28   : > { %505 = vmatprep.subr.bf16.mxu0 %v1522_v14 }
  0x29   : > { %1383 = vmatpush3.bf16.msra.mxu1 %v1535_v21 }
  0x2a   : > { %1384 = vmatprep.subr.bf16.mxu1 %v1628_v4 }
  0x2b   : > { %506 = vmatpush1.bf16.msra.mxu0 %v1524_v15 }
  0x2c   : > { %507 = vmatprep.subr.bf16.mxu0 %v1525_v17 }
  0x2d   : > { %1385 = vmatpush3.bf16.msra.mxu1 %v1536_v24 }
  0x2e   : > { %1386 = vmatprep.subr.bf16.mxu1 %v1628_v4 }
  0x2f   : > { %508 = vmatpush1.bf16.msra.mxu0 %v1527_v19 }
  0x30   : > { %509 = vmatprep.subr.bf16.mxu0 %v1528_v20 }
  0x31   : > { %1387 = vmatpush3.bf16.msra.mxu1 %v1537_v26 }
  0x32   : > { %1388 = vmatprep.subr.bf16.mxu1 %v1628_v4 }
  0x33   : > { %510 = vmatpush1.bf16.msra.mxu0 %v1530_v22 }
  0x34   : > { %1418 = vmatprep.subr.bf16.mxu0 %v1628_v4 }
  0x35   : > { %1389 = vmatpush3.bf16.msra.mxu1 %v1538_v27 }
  0x36   : > { %528 = vmatmul.mubr.bf16.vlgmr.msra.gmra.mxu0 %v317_v25  ;;  %1394 = vmatprep.subr.bf16.mxu1 %v1628_v4 }
  0x37   : > { %1420 = vmatprep.mubr.msk.bf16.mxu0 %vm1629_vm0, %v1628_v4 }
  0x38   : > { %1391 = vmatmul.mubr.bf16.vlgmr.msra.gmra.mxu1 %v317_v25 }
  0x39   : > { %1396 = vmatprep.mubr.msk.bf16.mxu1 %vm1629_vm0, %v1628_v4 }
  0xf6   : > { %v529_v34 = vpop.f32.mrf.mxu0 }
  0xf7   : > { %v530_v41 = vadd.f32 %v529_v34, %v355_v36 }
  0xf8   : > { %v531_v35 = vpop.f32.mrf.mxu0  ;;  %v570_v44 = vpop.f32.mrf.mxu1 }
  0xf9   : > { %v532_v37 = vadd.f32 %v531_v35, %v359_v33  ;;  %v586_v43 = vpack.c.bf16 %v530_v41, %v530_v41  ;;  %v1841_v50 = vadd.f32 %v570_v44, %v363_v48 }
  0xfa   : > { %v533_v38 = vpop.f32.mrf.mxu0  ;;  %v1392_v46 = vpop.f32.mrf.mxu1 }
  0xfb   : > { %594 = vrot.lane.b32.xlu1 %v532_v37, %s1630_s24  ;;  %591 = vrot.lane.b32.xlu0 %v532_v37, %s1631_s25  ;;  %v600_v39 = vpack.c.bf16 %v532_v37, %v532_v37  ;;  %v614_v51 = vpack.c.bf16 %v1841_v50, %v1841_v50 }
  0xfc   : > { %v534_v40 = vpop.f32.mrf.mxu0  ;;  %v573_v47 = vpop.f32.mrf.mxu1 }
  0xfd   : > { %v630_v42 = vsel %vm625_vm1, %v600_v39, 0  ;;  %v864_v52 = vsel %vm862_vm2, %v614_v51, 0 }
  0xfe   : > { %1395 = vmatpush3.bf16.xpose.msra.mxu1 %v630_v42  ;;  %v1393_v49 = vpop.f32.mrf.mxu1  ;;  %1419 = vmatpush3.bf16.msra.mxu0 %v864_v52 }
  0xff   : > { %580 = vrot.lane.b32.xlu1 %v530_v41, %s1630_s24  ;;  %577 = vrot.lane.b32.xlu0 %v530_v41, %s1631_s25 }
 0x100   : > { %1400 = vmatprep.subr.bf16.mxu1 %v1628_v4  ;;  %1430 = vmatprep.subr.bf16.mxu0 %v1628_v4 }
 0x103   : > { %583 = vrot.lane.b32.xlu1 %v530_v41, %s1632_s26  ;;  %597 = vrot.lane.b32.xlu0 %v532_v37, %s1632_s26 }
 0x105   : > { %1397 = vmatmul.mubr.msk.bf16.vlgmr.msra.gmra.mxu1 %vm625_vm1, %v586_v43 }
 0x106   : > { %1402 = vmatprep.mubr.msk.bf16.mxu1 %vm1629_vm0, %v1628_v4 }
 0x16d   : > { %v592_v53 = vpop.permute.xlu0 %591  ;;  %v595_v56 = vpop.permute.xlu1 %594 }
 0x16e   : > { %v601_v54 = vpack.c.bf16 %v592_v53, %v592_v53  ;;  %v602_v58 = vpack.c.bf16 %v595_v56, %v595_v56 }
 0x170   : > { %v676_v55 = vsel %vm625_vm1, %v601_v54, 0  ;;  %v722_v60 = vsel %vm625_vm1, %v602_v58, 0 }
 0x171   : > { %1401 = vmatpush3.bf16.xpose.msra.mxu1 %v676_v55  ;;  %v578_v57 = vpop.permute.xlu0 %577  ;;  %v581_v62 = vpop.permute.xlu1 %580 }
 0x172   : > { %1406 = vmatprep.subr.bf16.mxu1 %v1628_v4  ;;  %v587_v59 = vpack.c.bf16 %v578_v57, %v578_v57  ;;  %v588_v0 = vpack.c.bf16 %v581_v62, %v581_v62 }
 0x175   : > { %v598_v61 = vpop.permute.xlu0 %597  ;;  %v584_v2 = vpop.permute.xlu1 %583 }
 0x176   : > { %v603_v63 = vpack.c.bf16 %v598_v61, %v598_v61  ;;  %v589_v3 = vpack.c.bf16 %v584_v2, %v584_v2 }
 0x178   : > { %1403 = vmatmul.mubr.msk.bf16.vlgmr.msra.gmra.mxu1 %vm625_vm1, %v587_v59  ;;  %v768_v1 = vsel %vm625_vm1, %v603_v63, 0 }
 0x179   : > { %1407 = vmatpush3.bf16.xpose.msra.mxu1 %v722_v60  ;;  %1408 = vmatprep.mubr.msk.bf16.mxu1 %vm1629_vm0, %v1628_v4 }
 0x17a   : > { %1412 = vmatprep.subr.bf16.mxu1 %v1628_v4 }
 0x180   : > { %1409 = vmatmul.mubr.msk.bf16.vlgmr.msra.gmra.mxu1 %vm625_vm1, %v588_v0 }
 0x181   : > { %1413 = vmatpush3.bf16.xpose.msra.mxu1 %v768_v1  ;;  %1414 = vmatprep.mubr.msk.bf16.mxu1 %vm1629_vm0, %v1628_v4 }
 0x182   : > { %1424 = vmatprep.subr.bf16.mxu1 %v1628_v4 }
 0x188   : > { %1415 = vmatmul.mubr.msk.bf16.vlgmr.msra.gmra.mxu1 %vm625_vm1, %v589_v3 }
 0x189   : > { %1426 = vmatprep.mubr.msk.bf16.mxu1 %vm1629_vm0, %v1628_v4 }
 0x1c5   : > { %v666_v6 = vpop.f32.mrf.mxu1 }
 0x1c6   : > { %v667_v7 = vadd.f32 %v1316_v5, %v666_v6 }
 0x1c7   : > { %v1398_v8 = vpop.f32.mrf.mxu1 }
 0x1c8   : > { %v811_v9 = vsel %vm810_vm3, %v667_v7, -inf }
 0x1c9   : > { %812 = vmax.xlane.f32.xlu0 %v811_v9  ;;  %v669_v10 = vpop.f32.mrf.mxu1 }
 0x1cb   : > { %v1399_v11 = vpop.f32.mrf.mxu1 }
 0x238   : > { %v712_v12 = vpop.f32.mrf.mxu1 }
 0x239   : > { %v713_v13 = vadd.f32 %v1316_v5, %v712_v12 }
 0x23a   : > { %v1404_v14 = vpop.f32.mrf.mxu1 }
 0x23b   : > { %v814_v15 = vsel %vm810_vm3, %v713_v13, -inf }
 0x23c   : > { %815 = vmax.xlane.f32.xlu1 %v814_v15  ;;  %v715_v16 = vpop.f32.mrf.mxu1  ;;  %v1540_v15 = vld [vmem:[%s1978_s4 + $0x30] sm:$0xff]  }
 0x23e   : > { %v1405_v17 = vpop.f32.mrf.mxu1 }
 0x240   : > { %v758_v18 = vpop.f32.mrf.mxu1 }
 0x241   : > { %v759_v19 = vadd.f32 %v1316_v5, %v758_v18  ;;  %v1541_v18 = vld [vmem:[%s1978_s4 + $0x28] sm:$0xff]  }
 0x242   : > { %v1410_v20 = vpop.f32.mrf.mxu1 }
 0x243   : > { %v817_v21 = vsel %vm810_vm3, %v759_v19, -inf  ;;  %v1542_v20 = vld [vmem:[%s1978_s4 + $0x20] sm:$0xff]  }
 0x244   : > { %818 = vmax.xlane.f32.xlu0 %v817_v21  ;;  %v761_v22 = vpop.f32.mrf.mxu1  ;;  %v1543_v21 = vld [vmem:[%s1978_s4 + $0x18] sm:$0xff]  }
 0x245   : > { %v1544_v22 = vld [vmem:[%s1978_s4 + $0x10] sm:$0xff]  }
 0x246   : > { %v1411_v24 = vpop.f32.mrf.mxu1 }
 0x247   : > { %v1545_v24 = vld [vmem:[%s1978_s4 + $0x8] sm:$0xff]  }
 0x248   : > { %v804_v25 = vpop.f32.mrf.mxu1 }
 0x249   : > { %v805_v26 = vadd.f32 %v1316_v5, %v804_v25 }
 0x24a   : > { %v1416_v27 = vpop.f32.mrf.mxu1 }
 0x24b   : > { %v820_v28 = vsel %vm810_vm3, %v805_v26, -inf  ;;  %v1546_v27 = vld [vmem:[%s1978_s4] sm:$0xff]  }
 0x24c   : > { %821 = vmax.xlane.f32.xlu0 %v820_v28  ;;  %v807_v29 = vpop.f32.mrf.mxu1 }
 0x24d   : > { %605 = vrot.lane.b32.xlu1 %v1841_v50, %s1631_s25 }
 0x24e   : > { %v1417_v30 = vpop.f32.mrf.mxu1 }
 0x252   : > { %v813_v31 = vpop.xlane.xlu0 %812 }
 0x253   : > { %v823_v32 = vsub.f32 %v667_v7, %v813_v31 }
 0x255   : > { %v827_v33 = vmul.f32 1.442695, %v823_v32 }
 0x257   : > { %1547 = vpow2.f32 %v827_v33 }
 0x264   : > { %v1548_v34 = vpop.eup %1547 }
 0x265   : > { %v835_v35 = vsel %vm810_vm3, %v1548_v34, 0.0 }
 0x271   : > { %836 = vadd.xlane.f32.xlu1 %v835_v35 }
 0x2c5   : > { %v816_v36 = vpop.xlane.xlu1 %815 }
 0x2c6   : > { %v824_v37 = vsub.f32 %v713_v13, %v816_v36  ;;  %v1539_v13 = vld [vmem:[%s1978_s4 + $0x38] sm:$0xff]  }
 0x2c8   : > { %v829_v38 = vmul.f32 1.442695, %v824_v37 }
 0x2c9   : > { %v606_v39 = vpop.permute.xlu1 %605 }
 0x2ca   : > { %1549 = vpow2.f32 %v829_v38  ;;  %v615_v40 = vpack.c.bf16 %v606_v39, %v606_v39 }
 0x2cc   : > { %v910_v41 = vsel %vm862_vm2, %v615_v40, 0 }
 0x2cd   : > { %1425 = vmatpush3.bf16.msra.mxu1 %v910_v41  ;;  %v819_v42 = vpop.xlane.xlu0 %818 }
 0x2ce   : > { %v825_v43 = vsub.f32 %v759_v19, %v819_v42  ;;  %1436 = vmatprep.subr.bf16.mxu1 %v1628_v4 }
 0x2d0   : > { %v831_v44 = vmul.f32 1.442695, %v825_v43 }
 0x2d2   : > { %1551 = vpow2.f32 %v831_v44  ;;  %v1325_v44 = vld [vmem:[%s1979_s5] ss:$0 sm:$0xff] }
 0x2d5   : > { %v822_v45 = vpop.xlane.xlu0 %821 }
 0x2d6   : > { %v826_v46 = vsub.f32 %v805_v26, %v822_v45 }
 0x2d7   : > { %v1550_v47 = vpop.eup %1549 }
 0x2d8   : > { %v833_v48 = vmul.f32 1.442695, %v826_v46  ;;  %v838_v49 = vsel %vm810_vm3, %v1550_v47, 0.0 }
 0x2d9   : > { %839 = vadd.xlane.f32.xlu0 %v838_v49 }
 0x2da   : > { %1553 = vpow2.f32 %v833_v48 }
 0x2df   : > { %v1552_v51 = vpop.eup %1551 }
 0x2e0   : > { %v841_v52 = vsel %vm810_vm3, %v1552_v51, 0.0 }
 0x2e1   : > { %842 = vadd.xlane.f32.xlu1 %v841_v52 }
 0x2e7   : > { %v1554_v53 = vpop.eup %1553 }
 0x2e8   : > { %v844_v54 = vsel %vm810_vm3, %v1554_v53, 0.0 }
 0x2e9   : > { %845 = vadd.xlane.f32.xlu0 %v844_v54 }
 0x2f2   : > { %611 = vrot.lane.b32.xlu1 %v1841_v50, %s1632_s26 }
 0x2fa   : > { %v837_v55 = vpop.xlane.xlu1 %836 }
 0x2fb   : > { %1555 = vrcp.f32 %v837_v55 }
 0x2ff   : > { %608 = vrot.lane.b32.xlu0 %v1841_v50, %s1630_s24 }
 0x308   : > { %v1556_v56 = vpop.eup %1555 }
 0x309   : > { %v851_v57 = vmul.f32 %v1556_v56, %v1548_v34 }
 0x30b   : > { %v855_v58 = vpack.c.bf16 %v851_v57, %v851_v57 }
 0x30d   : > { %1421 = vmatmul.mubr.msk.bf16.vlgmr.msra.gmra.mxu0 %vm810_vm3, %v855_v58 }
 0x30e   : > { %1432 = vmatprep.mubr.msk.bf16.mxu0 %vm1629_vm0, %v1628_v4 }
 0x362   : > { %v840_v59 = vpop.xlane.xlu0 %839 }
 0x363   : > { %1557 = vrcp.f32 %v840_v59 }
 0x36a   : > { %v843_v60 = vpop.xlane.xlu1 %842 }
 0x36b   : > { %1559 = vrcp.f32 %v843_v60 }
 0x36e   : > { %v612_v61 = vpop.permute.xlu1 %611 }
 0x36f   : > { %v617_v63 = vpack.c.bf16 %v612_v61, %v612_v61 }
 0x370   : > { %v1558_v62 = vpop.eup %1557 }
 0x371   : > { %v852_v0 = vmul.f32 %v1558_v62, %v1550_v47  ;;  %v1002_v50 = vsel %vm862_vm2, %v617_v63, 0  ;;  %v1335_v63 = vld [vmem:[%s1981_s7] ss:$0 sm:$0xff] }
 0x372   : > { %v846_v1 = vpop.xlane.xlu0 %845 }
 0x373   : > { %1561 = vrcp.f32 %v846_v1  ;;  %v856_v2 = vpack.c.bf16 %v852_v0, %v852_v0 }
 0x375   : > { %1427 = vmatmul.mubr.msk.bf16.vlgmr.msra.gmra.mxu1 %vm810_vm3, %v856_v2 }
 0x376   : > { %1437 = vmatpush3.bf16.msra.mxu1 %v1002_v50  ;;  %v609_v3 = vpop.permute.xlu0 %608  ;;  %1438 = vmatprep.mubr.msk.bf16.mxu1 %vm1629_vm0, %v1628_v4 }
 0x377   : > { %v616_v5 = vpack.c.bf16 %v609_v3, %v609_v3 }
 0x378   : > { %v1560_v6 = vpop.eup %1559 }
 0x379   : > { %v956_v7 = vsel %vm862_vm2, %v616_v5, 0  ;;  %v853_v8 = vmul.f32 %v1560_v6, %v1552_v51 }
 0x37a   : > { %1431 = vmatpush3.bf16.msra.mxu0 %v956_v7 }
 0x37b   : > { %v857_v9 = vpack.c.bf16 %v853_v8, %v853_v8  ;;  %1442 = vmatprep.subr.bf16.mxu0 %v1628_v4 }
 0x37d   : > { %1433 = vmatmul.mubr.msk.bf16.vlgmr.msra.gmra.mxu0 %vm810_vm3, %v857_v9 }
 0x37e   : > { %1458 = vmatprep.mubr.msk.bf16.mxu0 %vm1629_vm0, %v1628_v4  ;;  %1443 = vmatpush3.bf16.msra.mxu0 %v1539_v13 }
 0x37f   : > { %1444 = vmatprep.subr.bf16.mxu0 %v1628_v4 }
 0x380   : > { %v1562_v10 = vpop.eup %1561 }
 0x381   : > { %v854_v11 = vmul.f32 %v1562_v10, %v1554_v53 }
 0x382   : > { %1445 = vmatpush3.bf16.msra.mxu0 %v1540_v15 }
 0x383   : > { %v858_v12 = vpack.c.bf16 %v854_v11, %v854_v11  ;;  %1446 = vmatprep.subr.bf16.mxu0 %v1628_v4 }
 0x385   : > { %1439 = vmatmul.mubr.msk.bf16.vlgmr.msra.gmra.mxu1 %vm810_vm3, %v858_v12 }
 0x386   : > { %1447 = vmatpush3.bf16.msra.mxu0 %v1541_v18 }
 0x387   : > { %1448 = vmatprep.subr.bf16.mxu0 %v1628_v4 }
 0x38a   : > { %1449 = vmatpush3.bf16.msra.mxu0 %v1542_v20 }
 0x38b   : > { %1450 = vmatprep.subr.bf16.mxu0 %v1628_v4 }
 0x38e   : > { %1451 = vmatpush3.bf16.msra.mxu0 %v1543_v21 }
 0x38f   : > { %1452 = vmatprep.subr.bf16.mxu0 %v1628_v4 }
 0x392   : > { %1453 = vmatpush3.bf16.msra.mxu0 %v1544_v22 }
 0x393   : > { %1454 = vmatprep.subr.bf16.mxu0 %v1628_v4 }
 0x396   : > { %1455 = vmatpush3.bf16.msra.mxu0 %v1545_v24 }
 0x397   : > { %1456 = vmatprep.subr.bf16.mxu0 %v1628_v4 }
 0x39a   : > { %1457 = vmatpush3.bf16.msra.mxu0 %v1546_v27 }
 0x3cd   : > { %v900_v14 = vpop.f32.mrf.mxu0 }
 0x3cf   : > { %v1422_v16 = vpop.f32.mrf.mxu0 }
 0x3d1   : > { %v903_v17 = vpop.f32.mrf.mxu0 }
 0x3d3   : > { %v1423_v19 = vpop.f32.mrf.mxu0 }
 0x435   : > { %v946_v25 = vpop.f32.mrf.mxu1 }
 0x436   : > { %1045 = vrot.lane.b32.xlu1 %v946_v25, %s1632_s26 }
 0x437   : > { %v1428_v26 = vpop.f32.mrf.mxu1 }
 0x439   : > { %v949_v28 = vpop.f32.mrf.mxu1 }
 0x43b   : > { %v1429_v29 = vpop.f32.mrf.mxu1 }
 0x43d   : > { %v992_v30 = vpop.f32.mrf.mxu0 }
 0x43e   : > { %1049 = vrot.lane.b32.xlu0 %v992_v30, %s1630_s24  ;;  %s1216_s24 = scalar_lea.hbm %s1982_s8, %s1337_s10 }
 0x43f   : > { %v1434_v31 = vpop.f32.mrf.mxu0 }
 0x441   : > { %v995_v32 = vpop.f32.mrf.mxu0 }
 0x443   : > { %v1435_v33 = vpop.f32.mrf.mxu0 }
 0x445   : > { %v1038_v34 = vpop.f32.mrf.mxu1 }
 0x446   : > { %1053 = vrot.lane.b32.xlu1 %v1038_v34, %s1631_s25  ;;  %s305_s25 = sand.u32 1, %s1617_s28  }
 0x447   : > { %v1440_v35 = vpop.f32.mrf.mxu1  ;;  %s1290_s23 = sshll.u32 %s305_s25, 3  ;;  %s1205_s26 = scalar_lea.sflag [#allocation3], %s305_s25 }
 0x448   : > { %s307_s18 = scalar_lea.vmem [#allocation2], %s1290_s23 }
 0x449   : > { %v1041_v36 = vpop.f32.mrf.mxu1  ;;  %s1218_s19 = sshll.u32 %s307_s18, 4  ;;  %s1219_s19 = int_to_ptr.vmem [resolvable:$true] %s1218_s19 }
 0x44a   : > { %s1565_s0 = scalar_lea.vmem %s1219_s19, 128  ;;  %p1572_p0 = scmp.lt.s32.totalorder %s1219_s19, %s1570_s13 }
 0x44b   : > { %v1441_v37 = vpop.f32.mrf.mxu1  ;;  %p1566_p11 = scmp.ne.s32.totalorder %s1219_s19, %s1565_s0  ;;  %p1573_p1 = scmp.lt.s32.totalorder %s1571_s9, %s1565_s0 }
 0x44d   : > { %p1567_p12 = pnand %p1566_p11, %p1717_p5  ;;  %p1574_p2 = por %p1573_p1, %p1572_p0 }
 0x44f   : > { %p1568_p13 = pneg %p1567_p12 }
 0x451   : > { %p1575_p3 = pnand %p1574_p2, %p1568_p13 }
 0x4a8   : > { %v1046_v4 = vpop.permute.xlu1 %1045 }
 0x4a9   : > { %v1056_v39 = vsel %vm625_vm1, %v900_v14, %v1046_v4 }
 0x4b0   : > { %v1050_v38 = vpop.permute.xlu0 %1049 }
 0x4b1   : > { %v1058_v40 = vsel %vm1057_vm4, %v1056_v39, %v1050_v38 }
 0x4b8   : > { %v1054_v41 = vpop.permute.xlu1 %1053 }
 0x4b9   : > { %v1060_v42 = vsel %vm1059_vm5, %v1058_v40, %v1054_v41 }
 0x4ba   : > { %v1061_v43 = vpack.c.bf16 %v1060_v42, %v1060_v42 }
 0x4bc   : > { %1459 = vmatmul.mubr.bf16.vlgmr.msra.gmra.mxu0 %v1061_v43 }
 0x57c   : > { %v1167_v45 = vpop.f32.mrf.mxu0 }
 0x57d   : > { %v1168_v46 = vadd.f32 %v1325_v44, %v1167_v45 }
 0x57e   : > { %v1460_v47 = vpop.f32.mrf.mxu0 }
 0x57f   : > { %v1173_v48 = vadd.f32 %v1168_v46, %v1803_v23  ;;  %v1334_v23 = vld [vmem:[%s1980_s6] ss:$0 sm:$0xff] }
 0x580   : > { %v1170_v49 = vpop.f32.mrf.mxu0 }
 0x581   : > { %1174 = vadd.xlane.f32.xlu0 %v1173_v48  ;;  %v1177_v51 = vmul.f32 %v1173_v48, %v1173_v48 }
 0x582   : > { %v1461_v52 = vpop.f32.mrf.mxu0 }
 0x583   : > { %1178 = vadd.xlane.f32.xlu1 %v1177_v51 }
 0x60a   : > { %v1175_v53 = vpop.xlane.xlu0 %1174 }
 0x60b   : > { %v1176_v54 = vmul.f32 0.03125, %v1175_v53 }
 0x60c   : > { %v1179_v55 = vpop.xlane.xlu1 %1178 }
 0x60d   : > { %v1181_v56 = vmul.f32 %v1176_v54, %v1176_v54  ;;  %v1180_v57 = vmul.f32 0.03125, %v1179_v55  ;;  %v1183_v60 = vsub.f32 %v1173_v48, %v1176_v54 }
 0x60f   : > { %v1182_v58 = vsub.f32 %v1180_v57, %v1181_v56 }
 0x611   : > { %v1184_v59 = vadd.f32 1e-12, %v1182_v58 }
 0x613   : > { %1563 = vrsqrt.f32 %v1184_v59 }
 0x620   : > { %v1564_v61 = vpop.eup %1563 }
 0x621   : > { %v1186_v62 = vmul.f32 %v1564_v61, %v1183_v60 }
 0x623   : > { %v1194_v0 = vmul.f32 %v1334_v23, %v1186_v62 }
 0x625   : > { %v1202_v1 = vadd.f32 %v1335_v63, %v1194_v0 }
 0x627   : > { %1203 = vst [vmem:[%s307_s18] sm:$0xff] %v1202_v1 }
 0x628   : > { %1578 = shalt.err (!%p1575_p3)
}
 0x629   : > { %s1579_s23 = scalar_lea.hbm %s1216_s24, 128  ;;  %s1583_s20 = scalar_lea.hbm %s1982_s8, 256 }
 0x62a   : > { %p1580_p4 = scmp.ne.s32.totalorder %s1216_s24, %s1579_s23  ;;  %p1584_p9 = scmp.lt.s32.totalorder %s1216_s24, %s1982_s8 }
 0x62b   : > { %p1585_p10 = scmp.lt.s32.totalorder %s1583_s20, %s1579_s23 }
 0x62c   : > { %p1581_p7 = pnand %p1580_p4, %p1717_p5 }
 0x62d   : > { %p1586_p11 = por %p1585_p10, %p1584_p9 }
 0x62e   : > { %p1582_p8 = pneg %p1581_p7 }
 0x630   : > { %p1587_p12 = pnand %p1586_p11, %p1582_p8 }
 0x632   : > { %1590 = shalt.err (!%p1587_p12)
}
 0x633   : > { %1462 = dma.vmem_to_hbm [thread:$0]  (%p1717_p5), %s1219_s19, 128, %s1216_s24, %s1205_s26  }
 0x634 PF: > { %p1468_p13 = scmp.ge.s32.totalorder %s1625_s30, 2  ;;  %s1230_s0 = sand.u32 1, %s1613_s27  }
 0x635   : > { %s1231_s21 = scalar_lea.sflag [#allocation3], %s1230_s0 }
 0x636   : > { %p1465_p0 = pnand %p1468_p13, %p1721_p6 }
 0x638   : > { %p1466_p1 = pneg %p1465_p0 }
 0x63a   : > { %1608 = dma.done.wait (%p1466_p1), %s1231_s21, 128  }
 0x63b   : > { %1610 = vsyncadd (%p1466_p1), %s1231_s21, 4294967168  ;;  %p18_p2 = scmp.ge.s32.totalorder %s1704_s11, 4   ;;  %s1987_s27 = smov %s1617_s28 }
 0x63c   : > { %s1988_s28 = smov %s1621_s29  ;;  %s1989_s29 = smov %s1715_s14 }
 0x63d   : > { %s1990_s30 = smov %s1704_s11  ;;  %20 = sbr.rel (!%p18_p2) target bundleno = 5 (0x5), region = 90 }
 0x642   :  { %1236 = vsyncpa [#allocation3], 1 }
 0x643   :  { %1238 = vsyncpa [#allocation3 + $0x1], 1 }

</bundles_post_ra>
